<compile_context>
chip_gen: v7x
topology: tpu7x:2x2x1
jax: 0.10.0
libtpu: 0.0.40
codegen_flags: <defaults>
</compile_context>

<pallas_src>
import jax
import jax.numpy as jnp
from jax.experimental import pallas as pl
from jax.experimental.pallas import tpu as pltpu


def _round_up(x, m):
    return (x + m - 1) // m * m


def _group_mlp_kernel(x_ref, w_ref, b_ref, o_ref):
    # Row axis is squeezed out by the BlockSpecs:
    #   x_ref: (B, Kp)   w_ref: (Kp, Np)   b_ref: (1, Np)   o_ref: (B, Np)
    x = x_ref[...].astype(w_ref.dtype)          # bf16 operands for the MXU
    acc = jnp.dot(x, w_ref[...], preferred_element_type=jnp.float32)
    o_ref[...] = (acc + b_ref[...]).astype(o_ref.dtype)


def group_mlp_forward(x, weights, biases, *, weight_dtype=jnp.bfloat16):
    """Group_MLP forward pass.

    x:       (B, R, K)  activations
    weights: (R, K, N)  per-row weight, laid out (in_dim, out_dim) = W_r.T
    biases:  (R, N)     per-row bias
    returns: (B, R, N)  float32
    """
    B, R, K = x.shape
    Rw, Kw, N = weights.shape
    assert (R, K) == (Rw, Kw), (x.shape, weights.shape)
    assert biases.shape == (R, N), biases.shape

    Kp = _round_up(K, 128)
    Np = _round_up(N, 128)

    # (R, B, K): contiguous per-row slabs, lane axis = K (zero-padded).
    x_rbk = jnp.transpose(x.astype(jnp.float32), (1, 0, 2))
    x_rbk = jnp.pad(x_rbk, ((0, 0), (0, 0), (0, Kp - K)))
    w = jnp.pad(weights.astype(weight_dtype),
                ((0, 0), (0, Kp - K), (0, Np - N)))
    b = jnp.pad(biases.astype(jnp.float32), ((0, 0), (0, Np - N)))[:, None, :]

    out = pl.pallas_call(
        _group_mlp_kernel,
        out_shape=jax.ShapeDtypeStruct((R, B, Np), jnp.float32),
        grid_spec=pltpu.PrefetchScalarGridSpec(
            num_scalar_prefetch=0,
            grid=(R,),
            in_specs=[
                pl.BlockSpec((pl.Squeezed(), B, Kp), lambda r: (r, 0, 0)),
                pl.BlockSpec((pl.Squeezed(), Kp, Np), lambda r: (r, 0, 0)),
                pl.BlockSpec((pl.Squeezed(), 1, Np), lambda r: (r, 0, 0)),
            ],
            out_specs=pl.BlockSpec((pl.Squeezed(), B, Np),
                                   lambda r: (r, 0, 0)),
        ),
        compiler_params=pltpu.CompilerParams(
            dimension_semantics=("parallel",)),
    )(x_rbk, w, b)

    # Drop padded output lanes, restore (B, R, N).
    return jnp.transpose(out[:, :, :N], (1, 0, 2))


if __name__ == "__main__":
    key = jax.random.PRNGKey(0)
    kx, kw, kb = jax.random.split(key, 3)

    batch, row, in_dim, out_dim = 2, 4, 32, 16
    x = jax.random.normal(kx, (batch, row, in_dim), jnp.float32)

    # nn.Linear default init: U(-1/sqrt(in_dim), 1/sqrt(in_dim)).
    bound = 1.0 / (in_dim ** 0.5)
    weights = jax.random.uniform(kw, (row, in_dim, out_dim), jnp.float32,
                                 -bound, bound)
    biases = jax.random.uniform(kb, (row, out_dim), jnp.float32,
                                -bound, bound)

    fwd = jax.jit(lambda a, w, b: group_mlp_forward(a, w, b,
                                                    weight_dtype=jnp.bfloat16))
    out = jax.block_until_ready(fwd(x, weights, biases))
    assert out.shape == (batch, row, out_dim), out.shape

    # Pure-JAX reference with identically bf16-rounded operands (the kernel
    # multiplies bf16 on the MXU and accumulates in f32).
    w_ref = weights.astype(jnp.bfloat16).astype(jnp.float32)
    x_ref = x.astype(jnp.bfloat16).astype(jnp.float32)
    ref = jnp.einsum("brk,rkn->brn", x_ref, w_ref,
                     precision=jax.lax.Precision.HIGHEST) + biases[None]

    assert bool(jnp.all(jnp.isfinite(out)))
    assert bool(jnp.allclose(out, ref, rtol=1e-2, atol=1e-3)), (
        float(jnp.max(jnp.abs(out - ref))))
    print("KERNEL_OK")
</pallas_src>

<mosaic_0001>
module attributes {stable_mosaic.version = 11 : i64} {
  func.func @_group_mlp_kernel(%arg0: i32, %arg1: memref<1x2x128xf32, #tpu.memory_space<vmem>>, %arg2: memref<1x128x128xbf16, #tpu.memory_space<vmem>>, %arg3: memref<1x1x128xf32, #tpu.memory_space<vmem>>, %arg4: memref<1x2x128xf32, #tpu.memory_space<vmem>>) attributes {dimension_semantics = [#tpu.dimension_semantics<parallel>], iteration_bounds = array<i64: 4>, scalar_prefetch = 0 : i64, scratch_operands = 0 : i64, tpu.core_type = #tpu.core_type<tc>, window_params = [{transform_indices = @transform_0, window_bounds = array<i64: 1, 2, 128>}, {transform_indices = @transform_1, window_bounds = array<i64: 1, 128, 128>}, {transform_indices = @transform_2, window_bounds = array<i64: 1, 1, 128>}, {transform_indices = @transform_3, window_bounds = array<i64: 1, 2, 128>}]} {
    %c0 = arith.constant 0 : index
    %c0_0 = arith.constant 0 : index
    %c0_1 = arith.constant 0 : index
    %0 = vector.load %arg1[%c0, %c0_0, %c0_1] : memref<1x2x128xf32, #tpu.memory_space<vmem>>, vector<1x2x128xf32>
    %1 = vector.shape_cast %0 : vector<1x2x128xf32> to vector<2x128xf32>
    %2 = arith.truncf %1 : vector<2x128xf32> to vector<2x128xbf16>
    %c0_2 = arith.constant 0 : index
    %c0_3 = arith.constant 0 : index
    %c0_4 = arith.constant 0 : index
    %3 = vector.load %arg2[%c0_2, %c0_3, %c0_4] : memref<1x128x128xbf16, #tpu.memory_space<vmem>>, vector<1x128x128xbf16>
    %4 = vector.shape_cast %3 : vector<1x128x128xbf16> to vector<128x128xbf16>
    %cst = arith.constant dense<0.000000e+00> : vector<2x128xf32>
    %5 = tpu.matmul %2, %4, %cst {dimension_numbers = #tpu.dot_dimension_numbers<[1], [0], [0], [1], [0, 0, 1, 1], [], []>} : vector<2x128xbf16>, vector<128x128xbf16>, vector<2x128xf32> -> vector<2x128xf32>
    %c0_5 = arith.constant 0 : index
    %c0_6 = arith.constant 0 : index
    %c0_7 = arith.constant 0 : index
    %6 = vector.load %arg3[%c0_5, %c0_6, %c0_7] : memref<1x1x128xf32, #tpu.memory_space<vmem>>, vector<1x1x128xf32>
    %7 = vector.shape_cast %6 : vector<1x1x128xf32> to vector<1x128xf32>
    %8 = vector.broadcast %7 : vector<1x128xf32> to vector<2x128xf32>
    %9 = arith.addf %5, %8 : vector<2x128xf32>
    %c0_8 = arith.constant 0 : index
    %c0_9 = arith.constant 0 : index
    %c0_10 = arith.constant 0 : index
    %10 = vector.load %arg4[%c0_8, %c0_9, %c0_10] : memref<1x2x128xf32, #tpu.memory_space<vmem>>, vector<1x2x128xf32>
    %11 = vector.shape_cast %10 : vector<1x2x128xf32> to vector<2x128xf32>
    %12 = vector.shape_cast %9 : vector<2x128xf32> to vector<1x2x128xf32>
    tpu.vector_store %arg4[%c0_8, %c0_9, %c0_10], %12 {strides = array<i32>} : memref<1x2x128xf32, #tpu.memory_space<vmem>>, vector<1x2x128xf32>,
    return
  }
  func.func @transform_0(%arg0: i32) -> (i32, i32, i32) {
    %c0_i32 = arith.constant 0 : i32
    %c0_i32_0 = arith.constant 0 : i32
    %c0_i32_1 = arith.constant 0 : i32
    return %arg0, %c0_i32, %c0_i32_0 : i32, i32, i32
  }
  func.func @transform_1(%arg0: i32) -> (i32, i32, i32) {
    %c0_i32 = arith.constant 0 : i32
    %c0_i32_0 = arith.constant 0 : i32
    %c0_i32_1 = arith.constant 0 : i32
    return %arg0, %c0_i32, %c0_i32_0 : i32, i32, i32
  }
  func.func @transform_2(%arg0: i32) -> (i32, i32, i32) {
    %c0_i32 = arith.constant 0 : i32
    %c0_i32_0 = arith.constant 0 : i32
    %c0_i32_1 = arith.constant 0 : i32
    return %arg0, %c0_i32, %c0_i32_0 : i32, i32, i32
  }
  func.func @transform_3(%arg0: i32) -> (i32, i32, i32) {
    %c0_i32 = arith.constant 0 : i32
    %c0_i32_0 = arith.constant 0 : i32
    %c0_i32_1 = arith.constant 0 : i32
    return %arg0, %c0_i32, %c0_i32_0 : i32, i32, i32
  }
}

</mosaic_0001>

<bundles_post_ra>
// kernel: _lambda_.1
= control target key start
LH: loop header
LB: loop body
LE: loop exit
PB: predicated region body
PF: predicated region fallthrough
CT: control target
= control target key end

     0   :  { %s487_s12 = smov 0   ;;  %s515_s0 = inlined_call_operand.vmem [shape: f32[4,2,128], index: 0, kind: input, shape index: {}]   ;;  %s516_s1 = inlined_call_operand.vmem [shape: bf16[4,128,128], index: 1, kind: input, shape index: {}]   ;;  %s517_s2 = inlined_call_operand.vmem [shape: f32[4,1,128], index: 2, kind: input, shape index: {}]   ;;  %s518_s3 = inlined_call_operand.vmem [shape: f32[4,2,128], index: 3, kind: output, shape index: {}]  }
   0x1 LB: > { %s389_s13 = sadd.s32 4294967295, %s463_s12   ;;  %p393_p0 = scmp.ge.s32.totalorder %s463_s12, 1  ;;  %s463_s12 = sphi %s487_s12, %s13_s12  }
   0x2   : > { %p154_p1 = scmp.lt.s32.totalorder %s463_s12, 5 }
   0x4   : > { %p155_p2 = pnand %p393_p0, %p154_p1 }
   0x5   : > { %p184_p3 = scmp.lt.s32.totalorder (!%p155_p2), %s389_s13, 3  ;;  %v465_v0 = vmov (!%p155_p2), 0.0   ;;  %vm466_vm0 = vmmov (!%p155_p2), 0  }
   0x6   : > { %158 = sbr.rel (%p155_p2) target bundleno = 263 (0x107), region = 32  ;;  %419 = vmatprep.subr.bf16.mxu0 (!%p155_p2), %v465_v0  ;;  %435 = vmatprep.mubr.msk.bf16.mxu0 (!%p155_p2), %vm466_vm0, %v465_v0 }
   0xd   : > { %s520_s13 = smov (!%p184_p3, %s389_s13), 3 }
   0xe   : > { %s409_s14 = sshll.u32 %s520_s13, 6  ;;  %s394_s18 = sshll.u32 %s520_s13, 1 }
   0xf   : > { %s192_s17 = scalar_lea.vmem %s516_s1, %s409_s14  ;;  %s187_s21 = scalar_lea.vmem %s515_s0, %s394_s18 }
  0x10   : > { %v449_v1 = vld [vmem:[%s192_s17] sm:$0xff]   ;;  %v450_v2 = vld [vmem:[%s192_s17 + $0x8] sm:$0xff]   ;;  %v451_v3 = vld [vmem:[%s192_s17 + $0x10] sm:$0xff]   ;;  %s195_s24 = scalar_lea.vmem %s517_s2, %s520_s13  ;;  %s199_s27 = scalar_lea.vmem %s518_s3, %s394_s18 }
  0x11   : > { %420 = vmatpush3.bf16.msra.mxu0 %v449_v1  ;;  %v452_v4 = vld [vmem:[%s192_s17 + $0x18] sm:$0xff]   ;;  %v453_v5 = vld [vmem:[%s192_s17 + $0x20] sm:$0xff]   ;;  %v454_v6 = vld [vmem:[%s192_s17 + $0x28] sm:$0xff]  }
  0x12   : > { %421 = vmatprep.subr.bf16.mxu0 %v465_v0  ;;  %v455_v7 = vld [vmem:[%s192_s17 + $0x30] sm:$0xff]   ;;  %v456_v8 = vld [vmem:[%s192_s17 + $0x38] sm:$0xff]   ;;  %v201_v9 = vld [vmem:[%s187_s21] sm:$0x3] }
  0x13   : > { %v202_v10 = vpack.c.bf16 %v201_v9, %v201_v9  ;;  %v398_v11 = vld [vmem:[%s195_s24] ss:$0 sm:$0xff] }
  0x15   : > { %422 = vmatpush3.bf16.msra.mxu0 %v450_v2 }
  0x16   : > { %423 = vmatprep.subr.bf16.mxu0 %v465_v0 }
  0x19   : > { %424 = vmatpush3.bf16.msra.mxu0 %v451_v3 }
  0x1a   : > { %425 = vmatprep.subr.bf16.mxu0 %v465_v0 }
  0x1d   : > { %426 = vmatpush3.bf16.msra.mxu0 %v452_v4 }
  0x1e   : > { %427 = vmatprep.subr.bf16.mxu0 %v465_v0 }
  0x21   : > { %428 = vmatpush3.bf16.msra.mxu0 %v453_v5 }
  0x22   : > { %429 = vmatprep.subr.bf16.mxu0 %v465_v0 }
  0x25   : > { %430 = vmatpush3.bf16.msra.mxu0 %v454_v6 }
  0x26   : > { %431 = vmatprep.subr.bf16.mxu0 %v465_v0 }
  0x29   : > { %432 = vmatpush3.bf16.msra.mxu0 %v455_v7 }
  0x2a   : > { %433 = vmatprep.subr.bf16.mxu0 %v465_v0 }
  0x2d   : > { %434 = vmatpush3.bf16.msra.mxu0 %v456_v8 }
  0x30   : > { %436 = vmatmul.mubr.bf16.vlgmr.msra.gmra.mrb[0].mxu0 %v202_v10 }
 0x103   : > { %v308_v12 = vpop.f32.mrb[0].mxu0 }
 0x104   : > { %v309_v13 = vadd.f32 %v398_v11, %v308_v12  ;;  %v437_v14 = vpop.f32.mrb[1].mxu0 }
 0x105   : > { %v311_v15 = vpop.f32.mrb[2].mxu0 }
 0x106   : > { %314 = vst [vmem:[%s199_s27] sm:$0x3] %v309_v13  ;;  %v438_v16 = vpop.f32.mrb[3].mxu0 }
 0x107 PF: > { %s13_s12 = sadd.s32 1, %s463_s12  }
 0x108   : > { %p10_p4 = scmp.ge.s32.totalorder %s13_s12, 6  }
 0x10a   :  { %12 = sbr.rel (!%p10_p4) target bundleno = 1 (0x1), region = 68 }

</bundles_post_ra>
